<compile_context>
chip_gen: v6e
topology: v6e:2x2x1
jax: 0.10.0
libtpu: 0.0.40
codegen_flags: <defaults>
</compile_context>

<pallas_src>
import functools

import jax
import jax.numpy as jnp
from jax.experimental import pallas as pl
from jax.experimental.pallas import tpu as pltpu

LANE = 128          # lane width: last dim of every tile padded to this
BF16_SUBLANE = 16   # a bf16 vreg is (16, 128): batch padded/tiled in 16s
MAX_TB = 1024       # max batch-tile rows (mem-bound: amortize per-step cost)


def _round_up(n, m):
    return ((n + m - 1) // m) * m


# ---------------------------------------------------------------------------
# Kernel
# ---------------------------------------------------------------------------
def mlp_kernel(x_ref,
               w1_ref, b1_ref,
               w2_ref, b2_ref,
               w3_ref, b3_ref,
               w4_ref, b4_ref,
               w5_ref, b5_ref,
               o_ref):
    """Fused 5-layer MLP forward on one (TB, F_pad) batch tile.

    Weights are bf16 and VMEM-resident (constant index_map). Matmuls run on
    the MXU with f32 accumulation; bias-add / ReLU stay in f32 on the VPU.
    x may arrive as f32 (aligned fast path) or bf16 (padded path); it is cast
    to bf16 immediately before each matmul.
    """

    def dense(h, w_ref, b_ref):
        return jnp.dot(h.astype(jnp.bfloat16), w_ref[...],
                       preferred_element_type=jnp.float32) + b_ref[...]

    h = x_ref[...]
    h = jnp.maximum(dense(h, w1_ref, b1_ref), 0.0)   # fc1 + relu
    h = jnp.maximum(dense(h, w2_ref, b2_ref), 0.0)   # fc2 + relu
    h = jnp.maximum(dense(h, w3_ref, b3_ref), 0.0)   # fc3 + relu
    h = jnp.maximum(dense(h, w4_ref, b4_ref), 0.0)   # fc4 + relu
    o_ref[...] = dense(h, w5_ref, b5_ref).astype(o_ref.dtype)   # fc5, bf16 out


# ---------------------------------------------------------------------------
# One-time parameter prep (hoisted out of the forward)
# ---------------------------------------------------------------------------
def prepare_params(params):
    """Pad feature dims to multiples of 128, cast weights to bf16 and biases to
    f32 row-vectors. Zero padding keeps the math exact; do this ONCE."""
    padded = []
    for w, b in params:
        fin, fout = w.shape
        fin_p, fout_p = _round_up(fin, LANE), _round_up(fout, LANE)
        w_p = jnp.zeros((fin_p, fout_p), jnp.bfloat16)
        w_p = w_p.at[:fin, :fout].set(w.astype(jnp.bfloat16))
        b_p = jnp.zeros((1, fout_p), jnp.float32)
        b_p = b_p.at[:, :fout].set(b.astype(jnp.float32))
        padded.append((w_p, b_p))
    return padded


def _batch_tiling(B):
    """Pick (B_pad, TB): TB a multiple of 16, B_pad a multiple of TB, and at
    least 2 grid steps whenever the batch allows it (v7x has 2 TensorCores)."""
    B16 = _round_up(B, BF16_SUBLANE)
    if B16 <= BF16_SUBLANE:
        return B16, B16                    # single tiny tile
    steps = max(2, pl.cdiv(B16, MAX_TB))   # >=2 parallel steps, tiles <= MAX_TB
    TB = _round_up(pl.cdiv(B16, steps), BF16_SUBLANE)
    return steps * TB, TB


# ---------------------------------------------------------------------------
# Forward wrapper (jitted)
# ---------------------------------------------------------------------------
@functools.partial(jax.jit, static_argnames=("num_classes",))
def mlp_forward(x_flat, padded_params, num_classes):
    """x_flat: (B, input_size) f32. padded_params: output of prepare_params().
    Returns (B, num_classes) f32."""
    B, F = x_flat.shape
    F_pad = _round_up(F, LANE)
    B_pad, TB = _batch_tiling(B)
    out_pad = padded_params[-1][0].shape[1]

    # Aligned fast path: no copy at all; kernel reads f32 x once and casts
    # in-kernel. Ragged path: pad (and cast) into a bf16 staging buffer.
    if B_pad == B and F_pad == F:
        x_p = x_flat
    else:
        x_p = jnp.zeros((B_pad, F_pad), jnp.bfloat16)
        x_p = x_p.at[:B, :F].set(x_flat.astype(jnp.bfloat16))

    flat_args = [x_p]
    in_specs = [pl.BlockSpec((TB, F_pad), lambda i: (i, 0))]
    layer_dims = []
    for w_p, b_p in padded_params:
        flat_args += [w_p, b_p]
        # Constant block index -> weights/biases stay VMEM-resident across steps.
        in_specs.append(pl.BlockSpec(w_p.shape, lambda i: (0, 0)))
        in_specs.append(pl.BlockSpec(b_p.shape, lambda i: (0, 0)))
        layer_dims.append(w_p.shape)

    flops = 2 * B_pad * sum(fi * fo for fi, fo in layer_dims)
    bytes_accessed = (x_p.size * x_p.dtype.itemsize
                      + sum(fi * fo * 2 + fo * 4 for fi, fo in layer_dims)
                      + B_pad * out_pad * 2)

    out_padded = pl.pallas_call(
        mlp_kernel,
        grid=(B_pad // TB,),
        in_specs=in_specs,
        out_specs=pl.BlockSpec((TB, out_pad), lambda i: (i, 0)),
        out_shape=jax.ShapeDtypeStruct((B_pad, out_pad), jnp.bfloat16),
        compiler_params=pltpu.CompilerParams(
            dimension_semantics=("parallel",)),
        cost_estimate=pl.CostEstimate(flops=flops, transcendentals=0,
                                      bytes_accessed=bytes_accessed),
    )(*flat_args)

    return out_padded[:B, :num_classes].astype(jnp.float32)


# ---------------------------------------------------------------------------
# Init + reference + demo
# ---------------------------------------------------------------------------
def init_params(key, input_size, hidden_size, num_classes):
    """PyTorch nn.Linear-style init: U(-1/sqrt(fan_in), 1/sqrt(fan_in)).
    Weights stored transposed: (in_features, out_features)."""
    dims = [input_size] + [hidden_size] * 4 + [num_classes]
    params = []
    for i in range(5):
        fan_in, fan_out = dims[i], dims[i + 1]
        key, kw, kb = jax.random.split(key, 3)
        bound = 1.0 / jnp.sqrt(jnp.float32(fan_in))
        w = jax.random.uniform(kw, (fan_in, fan_out), jnp.float32, -bound, bound)
        b = jax.random.uniform(kb, (fan_out,), jnp.float32, -bound, bound)
        params.append((w, b))
    return params


def reference_forward(x_flat, params):
    """Pure-JAX reference with the same bf16-input / f32-accumulate math."""
    h = x_flat
    for i, (w, b) in enumerate(params):
        h = jnp.dot(h.astype(jnp.bfloat16), w.astype(jnp.bfloat16),
                    preferred_element_type=jnp.float32) + b
        if i < len(params) - 1:
            h = jnp.maximum(h, 0.0)
    return h


if __name__ == "__main__":
    # Small shapes consistent with the module's forward (NCHW image flattened).
    B, C, H, W = 2, 4, 16, 16
    input_size = C * H * W          # 256
    hidden_size = 32
    num_classes = 10

    key = jax.random.PRNGKey(0)
    key, kx = jax.random.split(key)
    x = jax.random.normal(kx, (B, C, H, W), jnp.float32)
    params = init_params(key, input_size, hidden_size, num_classes)

    # One-time parameter prep (pad + bf16 cast), hoisted out of the forward.
    padded_params = prepare_params(params)

    # Glue: flatten exactly like torch's x.view(x.size(0), -1)
    x_flat = x.reshape(B, -1)

    out = jax.block_until_ready(mlp_forward(x_flat, padded_params, num_classes))
    ref = reference_forward(x_flat, params)
    assert out.shape == (B, num_classes)
    assert jnp.allclose(out, ref, atol=2e-2, rtol=2e-2), "mismatch (small batch)"

    # Second call exercising the aligned fast path (no pad copy) and a
    # 2-step "parallel" batch grid (both TensorCores on v7x).
    B2 = 32
    key, kx2 = jax.random.split(key)
    x2 = jax.random.normal(kx2, (B2, C, H, W), jnp.float32).reshape(B2, -1)
    out2 = jax.block_until_ready(mlp_forward(x2, padded_params, num_classes))
    ref2 = reference_forward(x2, params)
    assert out2.shape == (B2, num_classes)
    assert jnp.allclose(out2, ref2, atol=2e-2, rtol=2e-2), "mismatch (aligned batch)"

    print("KERNEL_OK")
</pallas_src>

<mosaic_0001>
module attributes {stable_mosaic.version = 11 : i64} {
  func.func @mlp_kernel(%arg0: i32, %arg1: memref<16x1024xbf16, #tpu.memory_space<vmem>>, %arg2: memref<1024x128xbf16, #tpu.memory_space<vmem>>, %arg3: memref<1x128xf32, #tpu.memory_space<vmem>>, %arg4: memref<128x128xbf16, #tpu.memory_space<vmem>>, %arg5: memref<1x128xf32, #tpu.memory_space<vmem>>, %arg6: memref<128x128xbf16, #tpu.memory_space<vmem>>, %arg7: memref<1x128xf32, #tpu.memory_space<vmem>>, %arg8: memref<128x128xbf16, #tpu.memory_space<vmem>>, %arg9: memref<1x128xf32, #tpu.memory_space<vmem>>, %arg10: memref<128x128xbf16, #tpu.memory_space<vmem>>, %arg11: memref<1x128xf32, #tpu.memory_space<vmem>>, %arg12: memref<16x128xbf16, #tpu.memory_space<vmem>>) attributes {dimension_semantics = [#tpu.dimension_semantics<parallel>], iteration_bounds = array<i64: 1>, scalar_prefetch = 0 : i64, scratch_operands = 0 : i64, tpu.core_type = #tpu.core_type<tc>, window_params = [{transform_indices = @transform_0, window_bounds = array<i64: 16, 1024>}, {pipeline_mode = #tpu.pipeline_mode<synchronous>, transform_indices = @transform_1, window_bounds = array<i64: 1024, 128>}, {pipeline_mode = #tpu.pipeline_mode<synchronous>, transform_indices = @transform_2, window_bounds = array<i64: 1, 128>}, {pipeline_mode = #tpu.pipeline_mode<synchronous>, transform_indices = @transform_3, window_bounds = array<i64: 128, 128>}, {pipeline_mode = #tpu.pipeline_mode<synchronous>, transform_indices = @transform_4, window_bounds = array<i64: 1, 128>}, {pipeline_mode = #tpu.pipeline_mode<synchronous>, transform_indices = @transform_5, window_bounds = array<i64: 128, 128>}, {pipeline_mode = #tpu.pipeline_mode<synchronous>, transform_indices = @transform_6, window_bounds = array<i64: 1, 128>}, {pipeline_mode = #tpu.pipeline_mode<synchronous>, transform_indices = @transform_7, window_bounds = array<i64: 128, 128>}, {pipeline_mode = #tpu.pipeline_mode<synchronous>, transform_indices = @transform_8, window_bounds = array<i64: 1, 128>}, {pipeline_mode = #tpu.pipeline_mode<synchronous>, transform_indices = @transform_9, window_bounds = array<i64: 128, 128>}, {pipeline_mode = #tpu.pipeline_mode<synchronous>, transform_indices = @transform_10, window_bounds = array<i64: 1, 128>}, {transform_indices = @transform_11, window_bounds = array<i64: 16, 128>}]} {
    %c0 = arith.constant 0 : index
    %c0_0 = arith.constant 0 : index
    %0 = vector.load %arg1[%c0, %c0_0] : memref<16x1024xbf16, #tpu.memory_space<vmem>>, vector<16x1024xbf16>
    %c0_1 = arith.constant 0 : index
    %c0_2 = arith.constant 0 : index
    %1 = vector.load %arg2[%c0_1, %c0_2] : memref<1024x128xbf16, #tpu.memory_space<vmem>>, vector<1024x128xbf16>
    %cst = arith.constant dense<0.000000e+00> : vector<16x128xf32>
    %2 = tpu.matmul %0, %1, %cst {dimension_numbers = #tpu.dot_dimension_numbers<[1], [0], [0], [1], [0, 0, 1, 1], [], []>} : vector<16x1024xbf16>, vector<1024x128xbf16>, vector<16x128xf32> -> vector<16x128xf32>
    %c0_3 = arith.constant 0 : index
    %c0_4 = arith.constant 0 : index
    %3 = vector.load %arg3[%c0_3, %c0_4] : memref<1x128xf32, #tpu.memory_space<vmem>>, vector<1x128xf32>
    %4 = vector.broadcast %3 : vector<1x128xf32> to vector<16x128xf32>
    %5 = arith.addf %2, %4 : vector<16x128xf32>
    %cst_5 = arith.constant 0.000000e+00 : f32
    %6 = vector.broadcast %cst_5 : f32 to vector<16x128xf32>
    %7 = arith.maximumf %5, %6 : vector<16x128xf32>
    %8 = arith.truncf %7 : vector<16x128xf32> to vector<16x128xbf16>
    %c0_6 = arith.constant 0 : index
    %c0_7 = arith.constant 0 : index
    %9 = vector.load %arg4[%c0_6, %c0_7] : memref<128x128xbf16, #tpu.memory_space<vmem>>, vector<128x128xbf16>
    %cst_8 = arith.constant dense<0.000000e+00> : vector<16x128xf32>
    %10 = tpu.matmul %8, %9, %cst_8 {dimension_numbers = #tpu.dot_dimension_numbers<[1], [0], [0], [1], [0, 0, 1, 1], [], []>} : vector<16x128xbf16>, vector<128x128xbf16>, vector<16x128xf32> -> vector<16x128xf32>
    %c0_9 = arith.constant 0 : index
    %c0_10 = arith.constant 0 : index
    %11 = vector.load %arg5[%c0_9, %c0_10] : memref<1x128xf32, #tpu.memory_space<vmem>>, vector<1x128xf32>
    %12 = vector.broadcast %11 : vector<1x128xf32> to vector<16x128xf32>
    %13 = arith.addf %10, %12 : vector<16x128xf32>
    %cst_11 = arith.constant 0.000000e+00 : f32
    %14 = vector.broadcast %cst_11 : f32 to vector<16x128xf32>
    %15 = arith.maximumf %13, %14 : vector<16x128xf32>
    %16 = arith.truncf %15 : vector<16x128xf32> to vector<16x128xbf16>
    %c0_12 = arith.constant 0 : index
    %c0_13 = arith.constant 0 : index
    %17 = vector.load %arg6[%c0_12, %c0_13] : memref<128x128xbf16, #tpu.memory_space<vmem>>, vector<128x128xbf16>
    %cst_14 = arith.constant dense<0.000000e+00> : vector<16x128xf32>
    %18 = tpu.matmul %16, %17, %cst_14 {dimension_numbers = #tpu.dot_dimension_numbers<[1], [0], [0], [1], [0, 0, 1, 1], [], []>} : vector<16x128xbf16>, vector<128x128xbf16>, vector<16x128xf32> -> vector<16x128xf32>
    %c0_15 = arith.constant 0 : index
    %c0_16 = arith.constant 0 : index
    %19 = vector.load %arg7[%c0_15, %c0_16] : memref<1x128xf32, #tpu.memory_space<vmem>>, vector<1x128xf32>
    %20 = vector.broadcast %19 : vector<1x128xf32> to vector<16x128xf32>
    %21 = arith.addf %18, %20 : vector<16x128xf32>
    %cst_17 = arith.constant 0.000000e+00 : f32
    %22 = vector.broadcast %cst_17 : f32 to vector<16x128xf32>
    %23 = arith.maximumf %21, %22 : vector<16x128xf32>
    %24 = arith.truncf %23 : vector<16x128xf32> to vector<16x128xbf16>
    %c0_18 = arith.constant 0 : index
    %c0_19 = arith.constant 0 : index
    %25 = vector.load %arg8[%c0_18, %c0_19] : memref<128x128xbf16, #tpu.memory_space<vmem>>, vector<128x128xbf16>
    %cst_20 = arith.constant dense<0.000000e+00> : vector<16x128xf32>
    %26 = tpu.matmul %24, %25, %cst_20 {dimension_numbers = #tpu.dot_dimension_numbers<[1], [0], [0], [1], [0, 0, 1, 1], [], []>} : vector<16x128xbf16>, vector<128x128xbf16>, vector<16x128xf32> -> vector<16x128xf32>
    %c0_21 = arith.constant 0 : index
    %c0_22 = arith.constant 0 : index
    %27 = vector.load %arg9[%c0_21, %c0_22] : memref<1x128xf32, #tpu.memory_space<vmem>>, vector<1x128xf32>
    %28 = vector.broadcast %27 : vector<1x128xf32> to vector<16x128xf32>
    %29 = arith.addf %26, %28 : vector<16x128xf32>
    %cst_23 = arith.constant 0.000000e+00 : f32
    %30 = vector.broadcast %cst_23 : f32 to vector<16x128xf32>
    %31 = arith.maximumf %29, %30 : vector<16x128xf32>
    %32 = arith.truncf %31 : vector<16x128xf32> to vector<16x128xbf16>
    %c0_24 = arith.constant 0 : index
    %c0_25 = arith.constant 0 : index
    %33 = vector.load %arg10[%c0_24, %c0_25] : memref<128x128xbf16, #tpu.memory_space<vmem>>, vector<128x128xbf16>
    %cst_26 = arith.constant dense<0.000000e+00> : vector<16x128xf32>
    %34 = tpu.matmul %32, %33, %cst_26 {dimension_numbers = #tpu.dot_dimension_numbers<[1], [0], [0], [1], [0, 0, 1, 1], [], []>} : vector<16x128xbf16>, vector<128x128xbf16>, vector<16x128xf32> -> vector<16x128xf32>
    %c0_27 = arith.constant 0 : index
    %c0_28 = arith.constant 0 : index
    %35 = vector.load %arg11[%c0_27, %c0_28] : memref<1x128xf32, #tpu.memory_space<vmem>>, vector<1x128xf32>
    %36 = vector.broadcast %35 : vector<1x128xf32> to vector<16x128xf32>
    %37 = arith.addf %34, %36 : vector<16x128xf32>
    %38 = arith.truncf %37 : vector<16x128xf32> to vector<16x128xbf16>
    %c0_29 = arith.constant 0 : index
    %c0_30 = arith.constant 0 : index
    %39 = vector.load %arg12[%c0_29, %c0_30] : memref<16x128xbf16, #tpu.memory_space<vmem>>, vector<16x128xbf16>
    tpu.vector_store %arg12[%c0_29, %c0_30], %38 {strides = array<i32>} : memref<16x128xbf16, #tpu.memory_space<vmem>>, vector<16x128xbf16>,
    return
  }
  func.func @transform_0(%arg0: i32) -> (i32, i32) {
    %c0_i32 = arith.constant 0 : i32
    %c0_i32_0 = arith.constant 0 : i32
    return %arg0, %c0_i32 : i32, i32
  }
  func.func @transform_1(%arg0: i32) -> (i32, i32) {
    %c0_i32 = arith.constant 0 : i32
    %c0_i32_0 = arith.constant 0 : i32
    %c0_i32_1 = arith.constant 0 : i32
    return %c0_i32, %c0_i32_0 : i32, i32
  }
  func.func @transform_2(%arg0: i32) -> (i32, i32) {
    %c0_i32 = arith.constant 0 : i32
    %c0_i32_0 = arith.constant 0 : i32
    %c0_i32_1 = arith.constant 0 : i32
    return %c0_i32, %c0_i32_0 : i32, i32
  }
  func.func @transform_3(%arg0: i32) -> (i32, i32) {
    %c0_i32 = arith.constant 0 : i32
    %c0_i32_0 = arith.constant 0 : i32
    %c0_i32_1 = arith.constant 0 : i32
    return %c0_i32, %c0_i32_0 : i32, i32
  }
  func.func @transform_4(%arg0: i32) -> (i32, i32) {
    %c0_i32 = arith.constant 0 : i32
    %c0_i32_0 = arith.constant 0 : i32
    %c0_i32_1 = arith.constant 0 : i32
    return %c0_i32, %c0_i32_0 : i32, i32
  }
  func.func @transform_5(%arg0: i32) -> (i32, i32) {
    %c0_i32 = arith.constant 0 : i32
    %c0_i32_0 = arith.constant 0 : i32
    %c0_i32_1 = arith.constant 0 : i32
    return %c0_i32, %c0_i32_0 : i32, i32
  }
  func.func @transform_6(%arg0: i32) -> (i32, i32) {
    %c0_i32 = arith.constant 0 : i32
    %c0_i32_0 = arith.constant 0 : i32
    %c0_i32_1 = arith.constant 0 : i32
    return %c0_i32, %c0_i32_0 : i32, i32
  }
  func.func @transform_7(%arg0: i32) -> (i32, i32) {
    %c0_i32 = arith.constant 0 : i32
    %c0_i32_0 = arith.constant 0 : i32
    %c0_i32_1 = arith.constant 0 : i32
    return %c0_i32, %c0_i32_0 : i32, i32
  }
  func.func @transform_8(%arg0: i32) -> (i32, i32) {
    %c0_i32 = arith.constant 0 : i32
    %c0_i32_0 = arith.constant 0 : i32
    %c0_i32_1 = arith.constant 0 : i32
    return %c0_i32, %c0_i32_0 : i32, i32
  }
  func.func @transform_9(%arg0: i32) -> (i32, i32) {
    %c0_i32 = arith.constant 0 : i32
    %c0_i32_0 = arith.constant 0 : i32
    %c0_i32_1 = arith.constant 0 : i32
    return %c0_i32, %c0_i32_0 : i32, i32
  }
  func.func @transform_10(%arg0: i32) -> (i32, i32) {
    %c0_i32 = arith.constant 0 : i32
    %c0_i32_0 = arith.constant 0 : i32
    %c0_i32_1 = arith.constant 0 : i32
    return %c0_i32, %c0_i32_0 : i32, i32
  }
  func.func @transform_11(%arg0: i32) -> (i32, i32) {
    %c0_i32 = arith.constant 0 : i32
    %c0_i32_0 = arith.constant 0 : i32
    return %arg0, %c0_i32 : i32, i32
  }
}

</mosaic_0001>

<bundles_post_ra>
// kernel: mlp_forward.1
= control target key start
LH: loop header
LB: loop body
LE: loop exit
PB: predicated region body
PF: predicated region fallthrough
CT: control target
= control target key end

     0   :  { %16 = vsyncpa [#allocation3], 0  ;;  %s2012_s0 = inlined_call_operand.vmem [shape: bf16[16,1024], index: 0, kind: input, shape index: {}]   ;;  %s2013_s1 = inlined_call_operand.hbm [shape: bf16[1024,128], index: 1, kind: input, shape index: {}]   ;;  %s2014_s2 = inlined_call_operand.vmem [shape: f32[1,128], index: 2, kind: input, shape index: {}]   ;;  %s2015_s3 = inlined_call_operand.vmem [shape: bf16[128,128], index: 3, kind: input, shape index: {}]   ;;  %s2016_s4 = inlined_call_operand.vmem [shape: f32[1,128], index: 4, kind: input, shape index: {}]   ;;  %s2017_s5 = inlined_call_operand.hbm [shape: bf16[128,128], index: 5, kind: input, shape index: {}]   ;;  %s2018_s6 = inlined_call_operand.vmem [shape: f32[1,128], index: 6, kind: input, shape index: {}]   ;;  %s2019_s7 = inlined_call_operand.hbm [shape: bf16[128,128], index: 7, kind: input, shape index: {}]   ;;  %s2020_s8 = inlined_call_operand.vmem [shape: f32[1,128], index: 8, kind: input, shape index: {}]   ;;  %s2021_s9 = inlined_call_operand.hbm [shape: bf16[128,128], index: 9, kind: input, shape index: {}]   ;;  %s2022_s10 = inlined_call_operand.vmem [shape: f32[1,128], index: 10, kind: input, shape index: {}]   ;;  %s2023_s11 = inlined_call_operand.vmem [shape: bf16[16,128], index: 11, kind: output, shape index: {}]  }
   0x1   :  { %17 = vsyncpa [#allocation5], 0 }
   0x2   :  { %18 = vsyncpa [#allocation8], 0  ;;  %s1814_s17 = smov [#allocation4]   ;;  %s1815_s19 = smov [#allocation2]  }
   0x3   :  { %s44_s18 = sshll.u32 %s1814_s17, 4  ;;  %s26_s20 = sshll.u32 %s1815_s19, 4  ;;  %s45_s18 = int_to_ptr.vmem [resolvable:$true] %s44_s18  ;;  %s27_s20 = int_to_ptr.vmem [resolvable:$true] %s26_s20 }
   0x4   :  { %s1736_s21 = scalar_lea.vmem %s45_s18, 1024  ;;  %p1741_p1 = scmp.lt.s32.totalorder %s45_s18, %s45_s18 }
   0x5   :  { %p1737_p0 = scmp.ne.s32.totalorder %s45_s18, %s1736_s21  ;;  %p1742_p2 = scmp.lt.s32.totalorder %s1736_s21, %s1736_s21 }
   0x7   :  { %p1743_p3 = por %p1742_p2, %p1741_p1 }
   0x9   :  { %p1744_p4 = pnand %p1743_p3, %p1737_p0 }
   0xb   :  { %1747 = shalt.err (!%p1744_p4)
}
   0xc   :  { %s1816_s22 = smov 64   ;;  %s1817_s23 = smov 4  }
   0xd   :  { %50 = dma.hbm_to_vmem [thread:$0]  %s2017_s5, 1024, %s45_s18, [#allocation5], %s1816_s22, %s1816_s22, %s1817_s23  }
   0xe   :  { %s1756_s26 = scalar_lea.vmem %s27_s20, 8192  ;;  %p1761_p6 = scmp.lt.s32.totalorder %s27_s20, %s27_s20 }
   0xf   :  { %p1757_p5 = scmp.ne.s32.totalorder %s27_s20, %s1756_s26  ;;  %p1762_p7 = scmp.lt.s32.totalorder %s1756_s26, %s1756_s26 }
  0x11   :  { %p1763_p8 = por %p1762_p7, %p1761_p6 }
  0x13   :  { %p1764_p9 = pnand %p1763_p8, %p1757_p5 }
  0x15   :  { %1767 = shalt.err (!%p1764_p9)
}
  0x16   :  { %32 = dma.hbm_to_vmem [thread:$0]  %s2013_s1, 8192, %s27_s20, [#allocation3], %s1816_s22, %s1816_s22, %s1817_s23  }
  0x17   :  { %s1818_s29 = smov [#allocation6]   ;;  %s1819_s12 = smov [#allocation7]  }
  0x18   :  { %s58_s30 = sshll.u32 %s1818_s29, 4  ;;  %s72_s13 = sshll.u32 %s1819_s12, 4  ;;  %s59_s30 = int_to_ptr.vmem [resolvable:$true] %s58_s30  ;;  %s73_s13 = int_to_ptr.vmem [resolvable:$true] %s72_s13 }
  0x19   :  { %s1776_s5 = scalar_lea.vmem %s59_s30, 1024  ;;  %p1781_p11 = scmp.lt.s32.totalorder %s59_s30, %s59_s30 }
  0x1a   :  { %p1777_p10 = scmp.ne.s32.totalorder %s59_s30, %s1776_s5  ;;  %p1782_p12 = scmp.lt.s32.totalorder %s1776_s5, %s1776_s5 }
  0x1c   :  { %p1783_p13 = por %p1782_p12, %p1781_p11 }
  0x1e   :  { %p1784_p0 = pnand %p1783_p13, %p1777_p10 }
  0x20   :  { %1787 = shalt.err (!%p1784_p0)
}
  0x21   :  { %64 = dma.hbm_to_vmem [thread:$0]  %s2019_s7, 1024, %s59_s30, [#allocation5], %s1816_s22, %s1816_s22, %s1817_s23  }
  0x22   :  { %s1796_s1 = scalar_lea.vmem %s73_s13, 1024  ;;  %p1801_p2 = scmp.lt.s32.totalorder %s73_s13, %s73_s13 }
  0x23   :  { %p1797_p1 = scmp.ne.s32.totalorder %s73_s13, %s1796_s1  ;;  %p1802_p3 = scmp.lt.s32.totalorder %s1796_s1, %s1796_s1 }
  0x25   :  { %p1803_p4 = por %p1802_p3, %p1801_p2 }
  0x27   :  { %p1804_p5 = pnand %p1803_p4, %p1797_p1 }
  0x29   :  { %1807 = shalt.err (!%p1804_p5)
}
  0x2a   :  { %78 = dma.hbm_to_vmem [thread:$0]  %s2021_s9, 1024, %s73_s13, [#allocation8], %s1816_s22, %s1816_s22, %s1817_s23  }
  0x2b   :  { %1808 = dma.done.wait [#allocation3], 8192  }
  0x2c   :  { %1809 = vsyncadd [#allocation3], 4294959104 }
  0x2d   :  { %1810 = dma.done.wait [#allocation5], 2048  }
  0x2e   :  { %1811 = vsyncadd [#allocation5], 4294965248 }
  0x2f   :  { %1812 = dma.done.wait [#allocation8], 1024  }
  0x30   :  { %1813 = vsyncadd [#allocation8], 4294966272  ;;  %v1632_v0 = vld [vmem:[#allocation2 + $0x78] sm:$0xff]   ;;  %v1636_v4 = vld [vmem:[#allocation2 + $0x70] sm:$0xff]   ;;  %vm1821_vm0 = vmmov 0  }
  0x31   :  { %v1633_v1 = vld [vmem:[#allocation2 + $0xf8] sm:$0xff]   ;;  %1420 = vmatprep.subr.bf16.mxu0 %v1632_v0  ;;  %v1637_v5 = vld [vmem:[#allocation2 + $0xf0] sm:$0xff]   ;;  %v1640_v8 = vld [vmem:[#allocation2 + $0x68] sm:$0xff]  }
  0x32   :  { %v1634_v2 = vld [vmem:[#allocation2 + $0x38] sm:$0xff]   ;;  %1442 = vmatprep.subr.bf16.mxu1 %v1633_v1  ;;  %v1638_v6 = vld [vmem:[#allocation2 + $0x30] sm:$0xff]   ;;  %v1641_v9 = vld [vmem:[#allocation2 + $0xe8] sm:$0xff]  }
  0x33   :  { %v1635_v3 = vld [vmem:[#allocation2 + $0xb8] sm:$0xff]   ;;  %1421 = vmatpush3.bf16.msra.mxu0 %v1634_v2  ;;  %v1639_v7 = vld [vmem:[#allocation2 + $0xb0] sm:$0xff]   ;;  %v1642_v10 = vld [vmem:[#allocation2 + $0x28] sm:$0xff]  }
  0x34   :  { %1443 = vmatpush3.bf16.msra.mxu1 %v1635_v3  ;;  %1422 = vmatprep.subr.bf16.mxu0 %v1636_v4  ;;  %v1643_v11 = vld [vmem:[#allocation2 + $0xa8] sm:$0xff]   ;;  %v1644_v12 = vld [vmem:[#allocation2 + $0x60] sm:$0xff]   ;;  %v1648_v16 = vld [vmem:[#allocation2 + $0x58] sm:$0xff]  }
  0x35   :  { %1444 = vmatprep.subr.bf16.mxu1 %v1637_v5  ;;  %v1645_v13 = vld [vmem:[#allocation2 + $0xe0] sm:$0xff]   ;;  %v1649_v17 = vld [vmem:[#allocation2 + $0xd8] sm:$0xff]   ;;  %v1652_v20 = vld [vmem:[#allocation2 + $0x50] sm:$0xff]  }
  0x36   :  { %v1646_v14 = vld [vmem:[#allocation2 + $0x20] sm:$0xff]   ;;  %v1650_v18 = vld [vmem:[#allocation2 + $0x18] sm:$0xff]   ;;  %v1653_v21 = vld [vmem:[#allocation2 + $0xd0] sm:$0xff]  }
  0x37   :  { %1423 = vmatpush3.bf16.msra.mxu0 %v1638_v6  ;;  %v1647_v15 = vld [vmem:[#allocation2 + $0xa0] sm:$0xff]   ;;  %v1651_v19 = vld [vmem:[#allocation2 + $0x98] sm:$0xff]   ;;  %v1654_v22 = vld [vmem:[#allocation2 + $0x10] sm:$0xff]  }
  0x38   :  { %1445 = vmatpush3.bf16.msra.mxu1 %v1639_v7  ;;  %1424 = vmatprep.subr.bf16.mxu0 %v1640_v8  ;;  %v1655_v23 = vld [vmem:[#allocation2 + $0x90] sm:$0xff]   ;;  %v1656_v24 = vld [vmem:[#allocation2 + $0x48] sm:$0xff]   ;;  %v1660_v28 = vld [vmem:[#allocation2 + $0x40] sm:$0xff]  }
  0x39   :  { %1446 = vmatprep.subr.bf16.mxu1 %v1641_v9  ;;  %v1657_v25 = vld [vmem:[#allocation2 + $0xc8] sm:$0xff]   ;;  %v1661_v29 = vld [vmem:[#allocation2 + $0xc0] sm:$0xff]   ;;  %v1664_v40 = vld [vmem:[#allocation2 + $0x178] sm:$0xff]  }
  0x3a   :  { %v1658_v26 = vld [vmem:[#allocation2 + $0x8] sm:$0xff]   ;;  %v1662_v30 = vld [vmem:[#allocation2] sm:$0xff]   ;;  %v1665_v41 = vld [vmem:[#allocation2 + $0x1f8] sm:$0xff]  }
  0x3b   :  { %1425 = vmatpush3.bf16.msra.mxu0 %v1642_v10  ;;  %v1659_v27 = vld [vmem:[#allocation2 + $0x88] sm:$0xff]   ;;  %v1663_v31 = vld [vmem:[#allocation2 + $0x80] sm:$0xff]   ;;  %v1666_v42 = vld [vmem:[#allocation2 + $0x138] sm:$0xff]  }
  0x3c   :  { %1447 = vmatpush3.bf16.msra.mxu1 %v1643_v11  ;;  %1426 = vmatprep.subr.bf16.mxu0 %v1644_v12  ;;  %v94_v32 = vld [vmem:[%s2012_s0] sm:$0xff]  ;;  %v95_v34 = vld [vmem:[%s2012_s0 + $0x8] sm:$0xff]  ;;  %v1667_v43 = vld [vmem:[#allocation2 + $0x1b8] sm:$0xff]  }
  0x3d   :  { %1448 = vmatprep.subr.bf16.mxu1 %v1645_v13  ;;  %v98_v33 = vld [vmem:[%s2012_s0 + $0x20] sm:$0xff]  ;;  %v99_v37 = vld [vmem:[%s2012_s0 + $0x28] sm:$0xff]  ;;  %v1668_v44 = vld [vmem:[#allocation2 + $0x170] sm:$0xff]  }
  0x3e   :  { %v1303_v35 = vcombine.low %v94_v32, %v98_v33  ;;  %v1304_v36 = vcombine.high %v94_v32, %v98_v33  ;;  %v1305_v38 = vcombine.low %v95_v34, %v99_v37  ;;  %v1306_v39 = vcombine.high %v95_v34, %v99_v37  ;;  %v1669_v45 = vld [vmem:[#allocation2 + $0x1f0] sm:$0xff]   ;;  %v1672_v48 = vld [vmem:[#allocation2 + $0x168] sm:$0xff]   ;;  %v1676_v52 = vld [vmem:[#allocation2 + $0x160] sm:$0xff]  }
  0x3f   :  { %1427 = vmatpush3.bf16.msra.mxu0 %v1646_v14  ;;  %v1670_v46 = vld [vmem:[#allocation2 + $0x130] sm:$0xff]   ;;  %v1673_v49 = vld [vmem:[#allocation2 + $0x1e8] sm:$0xff]   ;;  %v1677_v53 = vld [vmem:[#allocation2 + $0x1e0] sm:$0xff]  }
  0x40   :  { %1449 = vmatpush3.bf16.msra.mxu1 %v1647_v15  ;;  %1428 = vmatprep.subr.bf16.mxu0 %v1648_v16  ;;  %v1671_v47 = vld [vmem:[#allocation2 + $0x1b0] sm:$0xff]   ;;  %v1674_v50 = vld [vmem:[#allocation2 + $0x128] sm:$0xff]   ;;  %v1678_v54 = vld [vmem:[#allocation2 + $0x120] sm:$0xff]  }
  0x41   :  { %1450 = vmatprep.subr.bf16.mxu1 %v1649_v17  ;;  %693 = vmatprep.mubr.bf16.mxu0 %v1304_v36  ;;  %v1675_v51 = vld [vmem:[#allocation2 + $0x1a8] sm:$0xff]   ;;  %v1679_v55 = vld [vmem:[#allocation2 + $0x1a0] sm:$0xff]   ;;  %v1680_v56 = vld [vmem:[#allocation2 + $0x158] sm:$0xff]   ;;  %v1820_v17 = vmov 0.0  }
  0x42   :  { %734 = vmatprep.mubr.bf16.mxu1 %v1306_v39  ;;  %v1681_v57 = vld [vmem:[#allocation2 + $0x1d8] sm:$0xff]   ;;  %v1684_v60 = vld [vmem:[#allocation2 + $0x150] sm:$0xff]   ;;  %v1688_v0 = vld [vmem:[#allocation2 + $0x148] sm:$0xff]  }
  0x43   :  { %1429 = vmatpush3.bf16.msra.mxu0 %v1650_v18  ;;  %v1682_v58 = vld [vmem:[#allocation2 + $0x118] sm:$0xff]   ;;  %v1685_v61 = vld [vmem:[#allocation2 + $0x1d0] sm:$0xff]   ;;  %v1689_v1 = vld [vmem:[#allocation2 + $0x1c8] sm:$0xff]  }
  0x44   :  { %1451 = vmatpush3.bf16.msra.mxu1 %v1651_v19  ;;  %1430 = vmatprep.subr.bf16.mxu0 %v1652_v20  ;;  %v1683_v59 = vld [vmem:[#allocation2 + $0x198] sm:$0xff]   ;;  %v1686_v62 = vld [vmem:[#allocation2 + $0x110] sm:$0xff]   ;;  %v1690_v2 = vld [vmem:[#allocation2 + $0x108] sm:$0xff]  }
  0x45   :  { %1452 = vmatprep.subr.bf16.mxu1 %v1653_v21  ;;  %v1687_v63 = vld [vmem:[#allocation2 + $0x190] sm:$0xff]   ;;  %v1691_v3 = vld [vmem:[#allocation2 + $0x188] sm:$0xff]   ;;  %v1692_v4 = vld [vmem:[#allocation2 + $0x140] sm:$0xff]  }
  0x46   :  { %v1693_v5 = vld [vmem:[#allocation2 + $0x1c0] sm:$0xff]   ;;  %v96_v8 = vld [vmem:[%s2012_s0 + $0x10] sm:$0xff]  ;;  %v97_v12 = vld [vmem:[%s2012_s0 + $0x18] sm:$0xff] }
  0x47   :  { %1431 = vmatpush3.bf16.msra.mxu0 %v1654_v22  ;;  %v1694_v6 = vld [vmem:[#allocation2 + $0x100] sm:$0xff]   ;;  %v100_v9 = vld [vmem:[%s2012_s0 + $0x30] sm:$0xff]  ;;  %v101_v13 = vld [vmem:[%s2012_s0 + $0x38] sm:$0xff] }
  0x48   :  { %1453 = vmatpush3.bf16.msra.mxu1 %v1655_v23  ;;  %1432 = vmatprep.subr.bf16.mxu0 %v1656_v24  ;;  %v1695_v7 = vld [vmem:[#allocation2 + $0x180] sm:$0xff]   ;;  %v1307_v10 = vcombine.low %v96_v8, %v100_v9  ;;  %v1308_v11 = vcombine.high %v96_v8, %v100_v9  ;;  %v1309_v14 = vcombine.low %v97_v12, %v101_v13  ;;  %v1696_v16 = vld [vmem:[%s2015_s3 + $0x38] sm:$0xff]   ;;  %v1697_v18 = vld [vmem:[%s2015_s3 + $0x30] sm:$0xff]  }
  0x49   :  { %1454 = vmatprep.subr.bf16.mxu1 %v1657_v25  ;;  %v1310_v15 = vcombine.high %v97_v12, %v101_v13  ;;  %v1698_v19 = vld [vmem:[%s2015_s3 + $0x28] sm:$0xff]   ;;  %v1699_v20 = vld [vmem:[%s2015_s3 + $0x20] sm:$0xff]   ;;  %v1700_v21 = vld [vmem:[%s2015_s3 + $0x18] sm:$0xff]  }
  0x4a   :  { %v1701_v22 = vld [vmem:[%s2015_s3 + $0x10] sm:$0xff]   ;;  %v1702_v23 = vld [vmem:[%s2015_s3 + $0x8] sm:$0xff]   ;;  %v1703_v24 = vld [vmem:[%s2015_s3] sm:$0xff]  }
  0x4b   :  { %1433 = vmatpush3.bf16.msra.mxu0 %v1658_v26  ;;  %v1704_v25 = vld [vmem:[#allocation4 + $0x38] sm:$0xff]   ;;  %v1705_v26 = vld [vmem:[#allocation4 + $0x30] sm:$0xff]   ;;  %v1302_v37 = vld [vmem:[%s2014_s2] ss:$0 sm:$0xff] }
  0x4c   :  { %1455 = vmatpush3.bf16.msra.mxu1 %v1659_v27  ;;  %1434 = vmatprep.subr.bf16.mxu0 %v1660_v28  ;;  %v1706_v27 = vld [vmem:[#allocation4 + $0x28] sm:$0xff]   ;;  %v1707_v28 = vld [vmem:[#allocation4 + $0x20] sm:$0xff]   ;;  %v1716_v9 = vld [vmem:[#allocation6 + $0x18] sm:$0xff]  }
  0x4d   :  { %1456 = vmatprep.subr.bf16.mxu1 %v1661_v29  ;;  %v1708_v29 = vld [vmem:[#allocation4 + $0x18] sm:$0xff]   ;;  %v1715_v8 = vld [vmem:[#allocation6 + $0x20] sm:$0xff]  }
  0x4f   :  { %1435 = vmatpush3.bf16.msra.mxu0 %v1662_v30 }
  0x50   :  { %1457 = vmatpush3.bf16.msra.mxu1 %v1663_v31  ;;  %1464 = vmatprep.subr.bf16.mxu0 %v1664_v40 }
  0x51   :  { %1486 = vmatprep.subr.bf16.mxu1 %v1665_v41 }
  0x52   :  { %694 = vmatmul.mubr.bf16.vlgmr.msra.gmra.mxu0 %v1303_v35 }
  0x53   :  { %735 = vmatmul.mubr.bf16.vlgmr.msra.gmra.mxu1 %v1305_v38  ;;  %1465 = vmatpush3.bf16.msra.mxu0 %v1666_v42 }
  0x54   :  { %1487 = vmatpush3.bf16.msra.mxu1 %v1667_v43  ;;  %1466 = vmatprep.subr.bf16.mxu0 %v1668_v44 }
  0x55   :  { %1488 = vmatprep.subr.bf16.mxu1 %v1669_v45  ;;  %775 = vmatprep.mubr.bf16.mxu0 %v1308_v11 }
  0x56   :  { %816 = vmatprep.mubr.bf16.mxu1 %v1310_v15 }
  0x57   :  { %1467 = vmatpush3.bf16.msra.mxu0 %v1670_v46 }
  0x58   :  { %1489 = vmatpush3.bf16.msra.mxu1 %v1671_v47  ;;  %1468 = vmatprep.subr.bf16.mxu0 %v1672_v48 }
  0x59   :  { %1490 = vmatprep.subr.bf16.mxu1 %v1673_v49 }
  0x5b   :  { %1469 = vmatpush3.bf16.msra.mxu0 %v1674_v50 }
  0x5c   :  { %1491 = vmatpush3.bf16.msra.mxu1 %v1675_v51  ;;  %1470 = vmatprep.subr.bf16.mxu0 %v1676_v52 }
  0x5d   :  { %1492 = vmatprep.subr.bf16.mxu1 %v1677_v53 }
  0x5f   :  { %1471 = vmatpush3.bf16.msra.mxu0 %v1678_v54 }
  0x60   :  { %1493 = vmatpush3.bf16.msra.mxu1 %v1679_v55  ;;  %1472 = vmatprep.subr.bf16.mxu0 %v1680_v56 }
  0x61   :  { %1494 = vmatprep.subr.bf16.mxu1 %v1681_v57 }
  0x63   :  { %1473 = vmatpush3.bf16.msra.mxu0 %v1682_v58 }
  0x64   :  { %1495 = vmatpush3.bf16.msra.mxu1 %v1683_v59  ;;  %1474 = vmatprep.subr.bf16.mxu0 %v1684_v60 }
  0x65   :  { %1496 = vmatprep.subr.bf16.mxu1 %v1685_v61 }
  0x67   :  { %1475 = vmatpush3.bf16.msra.mxu0 %v1686_v62 }
  0x68   :  { %1497 = vmatpush3.bf16.msra.mxu1 %v1687_v63  ;;  %1476 = vmatprep.subr.bf16.mxu0 %v1688_v0 }
  0x69   :  { %1498 = vmatprep.subr.bf16.mxu1 %v1689_v1 }
  0x6b   :  { %1477 = vmatpush3.bf16.msra.mxu0 %v1690_v2  ;;  %v1709_v2 = vld [vmem:[#allocation4 + $0x10] sm:$0xff]  }
  0x6c   :  { %1499 = vmatpush3.bf16.msra.mxu1 %v1691_v3  ;;  %1478 = vmatprep.subr.bf16.mxu0 %v1692_v4  ;;  %v1710_v3 = vld [vmem:[#allocation4 + $0x8] sm:$0xff]   ;;  %v1711_v4 = vld [vmem:[#allocation4] sm:$0xff]  }
  0x6d   :  { %1500 = vmatprep.subr.bf16.mxu1 %v1693_v5  ;;  %v1712_v5 = vld [vmem:[#allocation6 + $0x38] sm:$0xff]  }
  0x6f   :  { %1479 = vmatpush3.bf16.msra.mxu0 %v1694_v6  ;;  %v1713_v6 = vld [vmem:[#allocation6 + $0x30] sm:$0xff]  }
  0x70   :  { %1501 = vmatpush3.bf16.msra.mxu1 %v1695_v7  ;;  %1544 = vmatprep.subr.bf16.mxu0 %v1820_v17  ;;  %v1714_v7 = vld [vmem:[#allocation6 + $0x28] sm:$0xff]  }
  0x71   :  { %1564 = vmatprep.subr.bf16.mxu1 %v1820_v17 }
  0x72   :  { %776 = vmatmul.mubr.bf16.vlgmr.msra.gmra.mxu0 %v1307_v10  ;;  %v1375_v10 = vld [vmem:[%s2016_s4] ss:$0 sm:$0xff] }
  0x73   :  { %817 = vmatmul.mubr.bf16.vlgmr.msra.gmra.mxu1 %v1309_v14  ;;  %1545 = vmatpush3.bf16.msra.mxu0 %v1696_v16 }
  0x74   :  { %1546 = vmatprep.subr.bf16.mxu0 %v1820_v17  ;;  %1560 = vmatprep.mubr.msk.bf16.mxu0 %vm1821_vm0, %v1820_v17 }
  0x75   :  { %1580 = vmatprep.mubr.msk.bf16.mxu1 %vm1821_vm0, %v1820_v17  ;;  %1565 = vmatpush3.bf16.msra.mxu1 %v1704_v25  ;;  %v1721_v25 = vld [vmem:[#allocation7 + $0x30] sm:$0xff]  }
  0x76   :  { %1566 = vmatprep.subr.bf16.mxu1 %v1820_v17 }
  0x77   :  { %1547 = vmatpush3.bf16.msra.mxu0 %v1697_v18 }
  0x78   :  { %1548 = vmatprep.subr.bf16.mxu0 %v1820_v17 }
  0x79   :  { %1567 = vmatpush3.bf16.msra.mxu1 %v1705_v26  ;;  %v1722_v26 = vld [vmem:[#allocation7 + $0x28] sm:$0xff]  }
  0x7a   :  { %1568 = vmatprep.subr.bf16.mxu1 %v1820_v17 }
  0x7b   :  { %1549 = vmatpush3.bf16.msra.mxu0 %v1698_v19 }
  0x7c   :  { %1550 = vmatprep.subr.bf16.mxu0 %v1820_v17 }
  0x7d   :  { %1569 = vmatpush3.bf16.msra.mxu1 %v1706_v27  ;;  %v1723_v27 = vld [vmem:[#allocation7 + $0x20] sm:$0xff]  }
  0x7e   :  { %1570 = vmatprep.subr.bf16.mxu1 %v1820_v17 }
  0x7f   :  { %1551 = vmatpush3.bf16.msra.mxu0 %v1699_v20 }
  0x80   :  { %1552 = vmatprep.subr.bf16.mxu0 %v1820_v17 }
  0x81   :  { %1571 = vmatpush3.bf16.msra.mxu1 %v1707_v28  ;;  %v1724_v28 = vld [vmem:[#allocation7 + $0x18] sm:$0xff]  }
  0x82   :  { %1572 = vmatprep.subr.bf16.mxu1 %v1820_v17 }
  0x83   :  { %1553 = vmatpush3.bf16.msra.mxu0 %v1700_v21  ;;  %v1717_v21 = vld [vmem:[#allocation6 + $0x10] sm:$0xff]  }
  0x84   :  { %1554 = vmatprep.subr.bf16.mxu0 %v1820_v17 }
  0x85   :  { %1573 = vmatpush3.bf16.msra.mxu1 %v1708_v29  ;;  %v1384_v29 = vld [vmem:[%s2018_s6] ss:$0 sm:$0xff] }
  0x86   :  { %1574 = vmatprep.subr.bf16.mxu1 %v1820_v17 }
  0x87   :  { %1555 = vmatpush3.bf16.msra.mxu0 %v1701_v22  ;;  %v1718_v22 = vld [vmem:[#allocation6 + $0x8] sm:$0xff]  }
  0x88   :  { %1556 = vmatprep.subr.bf16.mxu0 %v1820_v17 }
  0x89   :  { %1575 = vmatpush3.bf16.msra.mxu1 %v1709_v2 }
  0x8a   :  { %1576 = vmatprep.subr.bf16.mxu1 %v1820_v17 }
  0x8b   :  { %1557 = vmatpush3.bf16.msra.mxu0 %v1702_v23  ;;  %v1719_v23 = vld [vmem:[#allocation6] sm:$0xff]  }
  0x8c   :  { %1558 = vmatprep.subr.bf16.mxu0 %v1820_v17 }
  0x8d   :  { %1577 = vmatpush3.bf16.msra.mxu1 %v1710_v3 }
  0x8e   :  { %1578 = vmatprep.subr.bf16.mxu1 %v1820_v17 }
  0x8f   :  { %1559 = vmatpush3.bf16.msra.mxu0 %v1703_v24  ;;  %v1720_v24 = vld [vmem:[#allocation7 + $0x38] sm:$0xff]  }
  0x90   :  { %1584 = vmatprep.subr.bf16.mxu0 %v1820_v17 }
  0x91   :  { %1579 = vmatpush3.bf16.msra.mxu1 %v1711_v4 }
  0x92   :  { %1604 = vmatprep.subr.bf16.mxu1 %v1820_v17 }
 0x112   :  { %v1436_v30 = vpop.f32.mrf.mxu0 }
 0x113   :  { %v1458_v31 = vpop.f32.mrf.mxu1 }
 0x114   :  { %v1437_v32 = vpop.f32.mrf.mxu0 }
 0x115   :  { %v1459_v33 = vpop.f32.mrf.mxu1  ;;  %v1438_v35 = vadd.f32 %v1437_v32, %v1436_v30 }
 0x116   :  { %v1439_v34 = vpop.f32.mrf.mxu0  ;;  %v1460_v40 = vadd.f32 %v1459_v33, %v1458_v31 }
 0x117   :  { %v1461_v36 = vpop.f32.mrf.mxu1  ;;  %v696_v39 = vadd.f32 %v1438_v35, %v1302_v37 }
 0x118   :  { %v1440_v38 = vpop.f32.mrf.mxu0 }
 0x119   :  { %v1441_v41 = vadd.f32 %v1440_v38, %v1439_v34  ;;  %v1462_v42 = vpop.f32.mrf.mxu1  ;;  %v737_v46 = vadd.f32 %v1460_v40, %v696_v39  ;;  %v1725_v39 = vld [vmem:[#allocation7 + $0x10] sm:$0xff]   ;;  %v1726_v40 = vld [vmem:[#allocation7 + $0x8] sm:$0xff]  }
 0x11a   :  { %v1463_v51 = vadd.f32 %v1462_v42, %v1461_v36  ;;  %v1393_v42 = vld [vmem:[%s2020_s8] ss:$0 sm:$0xff] }
 0x11b   :  { %v699_v47 = vadd.f32 %v1441_v41, %v1302_v37  ;;  %v1727_v41 = vld [vmem:[#allocation7] sm:$0xff]  }
 0x11d   :  { %v740_v55 = vadd.f32 %v1463_v51, %v699_v47 }
 0x132   :  { %v1480_v43 = vpop.f32.mrf.mxu0 }
 0x133   :  { %v1502_v44 = vpop.f32.mrf.mxu1 }
 0x134   :  { %v1481_v45 = vpop.f32.mrf.mxu0 }
 0x135   :  { %v1482_v48 = vadd.f32 %v1481_v45, %v1480_v43  ;;  %v1503_v49 = vpop.f32.mrf.mxu1 }
 0x136   :  { %v1483_v50 = vpop.f32.mrf.mxu0  ;;  %v1504_v56 = vadd.f32 %v1503_v49, %v1502_v44 }
 0x137   :  { %v778_v52 = vadd.f32 %v1482_v48, %v737_v46  ;;  %v1505_v53 = vpop.f32.mrf.mxu1 }
 0x138   :  { %v1484_v54 = vpop.f32.mrf.mxu0 }
 0x139   :  { %v1485_v57 = vadd.f32 %v1484_v54, %v1483_v50  ;;  %v1506_v58 = vpop.f32.mrf.mxu1  ;;  %v819_v59 = vadd.f32 %v1504_v56, %v778_v52 }
 0x13a   :  { %v1507_v61 = vadd.f32 %v1506_v58, %v1505_v53 }
 0x13b   :  { %v781_v60 = vadd.f32 %v1485_v57, %v740_v55  ;;  %v825_v63 = vmax.f32 %v819_v59, 0.0 }
 0x13d   :  { %v822_v62 = vadd.f32 %v1507_v61, %v781_v60 }
 0x13f   :  { %v826_v0 = vmax.f32 %v822_v62, 0.0 }
 0x141   :  { %v827_v1 = vpack.c.bf16 %v826_v0, %v825_v63 }
 0x143   :  { %1561 = vmatmul.mubr.bf16.vlgmr.msra.gmra.mxu0 %v827_v1 }
 0x144   :  { %1600 = vmatprep.mubr.msk.bf16.mxu0 %vm1821_vm0, %v1820_v17  ;;  %1585 = vmatpush3.bf16.msra.mxu0 %v1712_v5 }
 0x145   :  { %1586 = vmatprep.subr.bf16.mxu0 %v1820_v17 }
 0x148   :  { %1587 = vmatpush3.bf16.msra.mxu0 %v1713_v6 }
 0x149   :  { %1588 = vmatprep.subr.bf16.mxu0 %v1820_v17 }
 0x14c   :  { %1589 = vmatpush3.bf16.msra.mxu0 %v1714_v7 }
 0x14d   :  { %1590 = vmatprep.subr.bf16.mxu0 %v1820_v17 }
 0x150   :  { %1591 = vmatpush3.bf16.msra.mxu0 %v1715_v8 }
 0x151   :  { %1592 = vmatprep.subr.bf16.mxu0 %v1820_v17 }
 0x154   :  { %1593 = vmatpush3.bf16.msra.mxu0 %v1716_v9 }
 0x155   :  { %1594 = vmatprep.subr.bf16.mxu0 %v1820_v17 }
 0x158   :  { %1595 = vmatpush3.bf16.msra.mxu0 %v1717_v21 }
 0x159   :  { %1596 = vmatprep.subr.bf16.mxu0 %v1820_v17 }
 0x15c   :  { %1597 = vmatpush3.bf16.msra.mxu0 %v1718_v22 }
 0x15d   :  { %1598 = vmatprep.subr.bf16.mxu0 %v1820_v17 }
 0x160   :  { %1599 = vmatpush3.bf16.msra.mxu0 %v1719_v23 }
 0x203   :  { %v933_v11 = vpop.f32.mrf.mxu0 }
 0x204   :  { %v934_v13 = vadd.f32 %v1375_v10, %v933_v11 }
 0x205   :  { %v1562_v12 = vpop.f32.mrf.mxu0 }
 0x206   :  { %v940_v18 = vmax.f32 %v934_v13, 0.0 }
 0x207   :  { %v936_v14 = vpop.f32.mrf.mxu0 }
 0x208   :  { %v937_v15 = vadd.f32 %v1375_v10, %v936_v14 }
 0x209   :  { %v1563_v16 = vpop.f32.mrf.mxu0 }
 0x20a   :  { %v941_v19 = vmax.f32 %v937_v15, 0.0 }
 0x20c   :  { %v942_v20 = vpack.c.bf16 %v941_v19, %v940_v18 }
 0x20e   :  { %1581 = vmatmul.mubr.bf16.vlgmr.msra.gmra.mxu1 %v942_v20 }
 0x20f   :  { %1620 = vmatprep.mubr.msk.bf16.mxu1 %vm1821_vm0, %v1820_v17  ;;  %1605 = vmatpush3.bf16.msra.mxu1 %v1720_v24 }
 0x210   :  { %1606 = vmatprep.subr.bf16.mxu1 %v1820_v17 }
 0x213   :  { %1607 = vmatpush3.bf16.msra.mxu1 %v1721_v25 }
 0x214   :  { %1608 = vmatprep.subr.bf16.mxu1 %v1820_v17 }
 0x217   :  { %1609 = vmatpush3.bf16.msra.mxu1 %v1722_v26 }
 0x218   :  { %1610 = vmatprep.subr.bf16.mxu1 %v1820_v17 }
 0x21b   :  { %1611 = vmatpush3.bf16.msra.mxu1 %v1723_v27 }
 0x21c   :  { %1612 = vmatprep.subr.bf16.mxu1 %v1820_v17 }
 0x21f   :  { %1613 = vmatpush3.bf16.msra.mxu1 %v1724_v28 }
 0x220   :  { %1614 = vmatprep.subr.bf16.mxu1 %v1820_v17 }
 0x223   :  { %1615 = vmatpush3.bf16.msra.mxu1 %v1725_v39 }
 0x224   :  { %1616 = vmatprep.subr.bf16.mxu1 %v1820_v17 }
 0x227   :  { %1617 = vmatpush3.bf16.msra.mxu1 %v1726_v40 }
 0x228   :  { %1618 = vmatprep.subr.bf16.mxu1 %v1820_v17  ;;  %v1402_v17 = vld [vmem:[%s2022_s10] ss:$0 sm:$0xff] }
 0x22b   :  { %1619 = vmatpush3.bf16.msra.mxu1 %v1727_v41 }
 0x2ce   :  { %v1048_v30 = vpop.f32.mrf.mxu1 }
 0x2cf   :  { %v1049_v32 = vadd.f32 %v1384_v29, %v1048_v30 }
 0x2d0   :  { %v1582_v31 = vpop.f32.mrf.mxu1 }
 0x2d1   :  { %v1055_v36 = vmax.f32 %v1049_v32, 0.0 }
 0x2d2   :  { %v1051_v33 = vpop.f32.mrf.mxu1 }
 0x2d3   :  { %v1052_v34 = vadd.f32 %v1384_v29, %v1051_v33 }
 0x2d4   :  { %v1583_v35 = vpop.f32.mrf.mxu1 }
 0x2d5   :  { %v1056_v37 = vmax.f32 %v1052_v34, 0.0 }
 0x2d7   :  { %v1057_v38 = vpack.c.bf16 %v1056_v37, %v1055_v36 }
 0x2d9   :  { %1601 = vmatmul.mubr.bf16.vlgmr.msra.gmra.mxu0 %v1057_v38 }
 0x399   :  { %v1163_v43 = vpop.f32.mrf.mxu0 }
 0x39a   :  { %v1164_v45 = vadd.f32 %v1393_v42, %v1163_v43 }
 0x39b   :  { %v1602_v44 = vpop.f32.mrf.mxu0 }
 0x39c   :  { %v1170_v49 = vmax.f32 %v1164_v45, 0.0 }
 0x39d   :  { %v1166_v46 = vpop.f32.mrf.mxu0 }
 0x39e   :  { %v1167_v47 = vadd.f32 %v1393_v42, %v1166_v46 }
 0x39f   :  { %v1603_v48 = vpop.f32.mrf.mxu0 }
 0x3a0   :  { %v1171_v50 = vmax.f32 %v1167_v47, 0.0 }
 0x3a2   :  { %v1172_v51 = vpack.c.bf16 %v1171_v50, %v1170_v49 }
 0x3a4   :  { %1621 = vmatmul.mubr.bf16.vlgmr.msra.gmra.mxu1 %v1172_v51 }
 0x464   :  { %v1278_v52 = vpop.f32.mrf.mxu1 }
 0x465   :  { %v1279_v55 = vadd.f32 %v1402_v17, %v1278_v52 }
 0x466   :  { %v1622_v53 = vpop.f32.mrf.mxu1 }
 0x468   :  { %v1281_v54 = vpop.f32.mrf.mxu1 }
 0x469   :  { %v1282_v56 = vadd.f32 %v1402_v17, %v1281_v54 }
 0x46a   :  { %v1623_v57 = vpop.f32.mrf.mxu1 }
 0x46b   :  { %v1418_v58 = vpack.c.bf16 %v1282_v56, %v1279_v55 }
 0x46d   :  { %1419 = vst [vmem:[%s2023_s11] sm:$0xff] %v1418_v58  }
 0x46e   :  { %1299 = vsyncpa [#allocation3], 1 }
 0x46f   :  { %1300 = vsyncpa [#allocation5], 1 }
 0x470   :  { %1301 = vsyncpa [#allocation8], 1 }

</bundles_post_ra>
